<compile_context>
chip_gen: v5e
topology: v5e:2x2
jax: 0.10.0
libtpu: 0.0.40
codegen_flags: <defaults>
</compile_context>

<pallas_src>
import jax
import jax.numpy as jnp
from jax.experimental import pallas as pl
from jax.experimental.pallas import tpu as pltpu


def _fused_affine_kernel(scale_ref, bias_ref, x_ref, o_ref):
    """Fused per-row affine over a (TM, TN) tile.

    scale_ref : VMEM (TM, 1) f32   effective per-row scale
    bias_ref  : VMEM (TM, 1) f32   effective per-row bias
    x_ref     : VMEM (TM, TN)      feature-map rows (native dtype)
    o_ref     : VMEM (TM, TN)      output rows (native dtype)
    """
    x = x_ref[...].astype(jnp.float32)
    o_ref[...] = (x * scale_ref[...] + bias_ref[...]).astype(o_ref.dtype)


def _chip_params():
    """Generation-aware (target block bytes, vmem limit, #parallel TCs)."""
    kind = ""
    try:
        kind = jax.devices()[0].device_kind.lower()
    except Exception:
        pass
    if "v7" in kind:
        # 2 TCs/chip, 3.2 TB/s HBM, only 64 MiB VMEM per TC:
        # ~6 MiB blocks -> ~24 MiB double-buffered in+out, cap at 48 MiB.
        return 6 * 1024 * 1024, 48 * 1024 * 1024, 2
    # v5e / v6e: single TensorCore, 128 MiB physical VMEM -> big blocks.
    return 8 * 1024 * 1024, 64 * 1024 * 1024, 1


def sequential_flow(x_nchw, logpx, log_scales, biases, reg_states=tuple(),
                    *, reverse=False, inds=None, jacfree=False):
    """Pallas-fused forward of SequentialFlow with L affine flow layers.

    x_nchw     : (N, C, H, W)        any float dtype (preserved)
    logpx      : (N,) float32 or None (initialized to zeros like FFJORD)
    log_scales : (L, C) float
    biases     : (L, C) float
    Returns (x, logpx, reg_states) matching the PyTorch module's signature.
    """
    N, C, H, W = x_nchw.shape
    L, Cs = log_scales.shape
    assert Cs == C
    HW = H * W

    if logpx is None:
        logpx = jnp.zeros((N,), jnp.float32)
    if inds is None:
        inds = tuple(range(L - 1, -1, -1)) if reverse else tuple(range(L))
    else:
        inds = tuple(int(i) for i in inds)

    # ---- Algebraic fusion of the whole chain (wrapper-side glue) ----------
    # Composition of per-channel affines is one affine; scale is folded in
    # log-space (exp of the summed log-scales) for numerical stability, and
    # the total log-det is one scalar added to logpx outside the kernel.
    ls = log_scales.astype(jnp.float32)
    bs = biases.astype(jnp.float32)
    sum_s = jnp.zeros((C,), jnp.float32)
    bias_eff = jnp.zeros((C,), jnp.float32)
    for l in inds:
        s = ls[l]
        b = bs[l]
        if reverse:
            a = jnp.exp(-s)
            c = -b * a
        else:
            a = jnp.exp(s)
            c = b
        sum_s = sum_s + s
        bias_eff = a * bias_eff + c
    sign = -1.0 if reverse else 1.0
    scale_eff = jnp.exp(sign * sum_s)
    logdet_total = -sign * jnp.sum(sum_s) * HW
    logpx_out = logpx + logdet_total.astype(logpx.dtype)

    # ---- Lane/sublane-friendly 2D layout (no pads, no output slice) -------
    rows = N * C
    x2 = x_nchw.reshape(rows, HW)            # contiguous view, dtype preserved
    itemsize = x2.dtype.itemsize
    sub = 8 * max(1, 4 // itemsize)          # sublane multiple incl. packing
    lane = 128

    target_block_bytes, vmem_limit, n_cores = _chip_params()

    # Lane-axis tile: full HW unless even a minimal-row block exceeds the
    # per-block budget; then tile HW into a multiple of 128 (2-D grid).
    if sub * HW * itemsize > target_block_bytes and HW > lane:
        tn = max(lane, (target_block_bytes // (sub * itemsize)) // lane * lane)
        tn = min(tn, (HW // lane) * lane)
    else:
        tn = HW

    # Row-axis tile: as many rows as fit the per-block byte budget.
    tm_cap = max(sub, (target_block_bytes // max(1, tn * itemsize)) // sub * sub)
    tm = rows if rows <= tm_cap else tm_cap

    # v7x megacore: give each TensorCore >= 2 grid steps so prefetch of i+1
    # overlaps compute/writeback of i.  Never split on single-TC chips.
    if n_cores >= 2:
        min_steps = 2 * n_cores
        if pl.cdiv(rows, tm) * pl.cdiv(HW, tn) < min_steps and rows >= min_steps * sub:
            tm = max(sub, (rows // min_steps) // sub * sub)

    grid = (pl.cdiv(rows, tm), pl.cdiv(HW, tn))

    scale_rows = jnp.tile(scale_eff, N).reshape(rows, 1)
    bias_rows = jnp.tile(bias_eff, N).reshape(rows, 1)

    out2 = pl.pallas_call(
        _fused_affine_kernel,
        out_shape=jax.ShapeDtypeStruct((rows, HW), x2.dtype),
        grid=grid,
        in_specs=[
            pl.BlockSpec((tm, 1), lambda i, j: (i, 0)),
            pl.BlockSpec((tm, 1), lambda i, j: (i, 0)),
            pl.BlockSpec((tm, tn), lambda i, j: (i, j)),
        ],
        out_specs=pl.BlockSpec((tm, tn), lambda i, j: (i, j)),
        compiler_params=pltpu.CompilerParams(
            dimension_semantics=("parallel", "parallel"),
            vmem_limit_bytes=vmem_limit),
    )(scale_rows, bias_rows, x2)

    return out2.reshape(N, C, H, W), logpx_out, reg_states


def _reference(x, logpx, log_scales, biases, reverse=False):
    """Pure-JAX per-layer reference matching the PyTorch semantics."""
    N, C, H, W = x.shape
    HW = H * W
    L = log_scales.shape[0]
    order = range(L - 1, -1, -1) if reverse else range(L)
    lp = logpx
    x = x.astype(jnp.float32)
    for l in order:
        s = log_scales[l].reshape(1, C, 1, 1)
        b = biases[l].reshape(1, C, 1, 1)
        ld = jnp.sum(log_scales[l]) * HW
        if reverse:
            x = (x - b) * jnp.exp(-s)
            lp = lp + ld
        else:
            x = x * jnp.exp(s) + b
            lp = lp - ld
    return x, lp


if __name__ == "__main__":
    key = jax.random.PRNGKey(0)
    k_x, k_s, k_b = jax.random.split(key, 3)

    N, C, H, W = 2, 4, 16, 16
    L = 3  # number of flow layers in the chain

    x = jax.random.normal(k_x, (N, C, H, W), dtype=jnp.float32)
    logpx = jnp.zeros((N,), jnp.float32)
    log_scales = 0.1 * jax.random.normal(k_s, (L, C), dtype=jnp.float32)
    biases = 0.1 * jax.random.normal(k_b, (L, C), dtype=jnp.float32)

    # Forward pass through the chain.
    y, logpy, reg = sequential_flow(x, logpx, log_scales, biases,
                                    reverse=False)
    y = jax.block_until_ready(y)
    logpy = jax.block_until_ready(logpy)

    # Reverse pass (same container, reverse=True) — should invert the forward.
    x_rec, logpx_rec, _ = sequential_flow(y, logpy, log_scales, biases,
                                          reverse=True)
    x_rec = jax.block_until_ready(x_rec)
    logpx_rec = jax.block_until_ready(logpx_rec)

    # Check against a pure-JAX reference and the invertibility property.
    y_ref, logpy_ref = _reference(x, logpx, log_scales, biases, reverse=False)
    assert jnp.allclose(y, y_ref, rtol=1e-4, atol=1e-5)
    assert jnp.allclose(logpy, logpy_ref, rtol=1e-4, atol=1e-4)
    assert jnp.allclose(x_rec, x, rtol=1e-4, atol=1e-4)
    assert jnp.allclose(logpx_rec, logpx, rtol=1e-4, atol=1e-4)

    # bf16 smoke test: dtype is preserved end-to-end (no forced f32 traffic).
    y_bf, _, _ = sequential_flow(x.astype(jnp.bfloat16), logpx, log_scales,
                                 biases, reverse=False)
    y_bf = jax.block_until_ready(y_bf)
    assert y_bf.dtype == jnp.bfloat16
    assert jnp.allclose(y_bf.astype(jnp.float32), y_ref, rtol=5e-2, atol=5e-2)

    print("KERNEL_OK")
</pallas_src>

<mosaic_0001>
module attributes {stable_mosaic.version = 11 : i64} {
  func.func @_fused_affine_kernel(%arg0: i32, %arg1: i32, %arg2: memref<8x1xf32, #tpu.memory_space<vmem>>, %arg3: memref<8x1xf32, #tpu.memory_space<vmem>>, %arg4: memref<8x256xf32, #tpu.memory_space<vmem>>, %arg5: memref<8x256xf32, #tpu.memory_space<vmem>>) attributes {dimension_semantics = [#tpu.dimension_semantics<parallel>, #tpu.dimension_semantics<parallel>], iteration_bounds = array<i64: 1, 1>, scalar_prefetch = 0 : i64, scratch_operands = 0 : i64, tpu.core_type = #tpu.core_type<tc>, window_params = [{transform_indices = @transform_0, window_bounds = array<i64: 8, 1>}, {transform_indices = @transform_1, window_bounds = array<i64: 8, 1>}, {transform_indices = @transform_2, window_bounds = array<i64: 8, 256>}, {transform_indices = @transform_3, window_bounds = array<i64: 8, 256>}]} {
    %c0 = arith.constant 0 : index
    %c0_0 = arith.constant 0 : index
    %0 = vector.load %arg4[%c0, %c0_0] : memref<8x256xf32, #tpu.memory_space<vmem>>, vector<8x256xf32>
    %c0_1 = arith.constant 0 : index
    %c0_2 = arith.constant 0 : index
    %1 = vector.load %arg2[%c0_1, %c0_2] : memref<8x1xf32, #tpu.memory_space<vmem>>, vector<8x1xf32>
    %2 = vector.broadcast %1 : vector<8x1xf32> to vector<8x256xf32>
    %3 = arith.mulf %0, %2 : vector<8x256xf32>
    %c0_3 = arith.constant 0 : index
    %c0_4 = arith.constant 0 : index
    %4 = vector.load %arg3[%c0_3, %c0_4] : memref<8x1xf32, #tpu.memory_space<vmem>>, vector<8x1xf32>
    %5 = vector.broadcast %4 : vector<8x1xf32> to vector<8x256xf32>
    %6 = arith.addf %3, %5 : vector<8x256xf32>
    %c0_5 = arith.constant 0 : index
    %c0_6 = arith.constant 0 : index
    %7 = vector.load %arg5[%c0_5, %c0_6] : memref<8x256xf32, #tpu.memory_space<vmem>>, vector<8x256xf32>
    tpu.vector_store %arg5[%c0_5, %c0_6], %6 {strides = array<i32>} : memref<8x256xf32, #tpu.memory_space<vmem>>, vector<8x256xf32>,
    return
  }
  func.func @transform_0(%arg0: i32, %arg1: i32) -> (i32, i32) {
    %c0_i32 = arith.constant 0 : i32
    %c0_i32_0 = arith.constant 0 : i32
    return %arg0, %c0_i32 : i32, i32
  }
  func.func @transform_1(%arg0: i32, %arg1: i32) -> (i32, i32) {
    %c0_i32 = arith.constant 0 : i32
    %c0_i32_0 = arith.constant 0 : i32
    return %arg0, %c0_i32 : i32, i32
  }
  func.func @transform_2(%arg0: i32, %arg1: i32) -> (i32, i32) {
    %c0_i32 = arith.constant 0 : i32
    return %arg0, %arg1 : i32, i32
  }
  func.func @transform_3(%arg0: i32, %arg1: i32) -> (i32, i32) {
    %c0_i32 = arith.constant 0 : i32
    return %arg0, %arg1 : i32, i32
  }
}

</mosaic_0001>

<bundles_post_ra>
// kernel: tpu_custom_call.1
= control target key start
LH: loop header
LB: loop body
LE: loop exit
PB: predicated region body
PF: predicated region fallthrough
CT: control target
= control target key end

     0   :  { %s117_s0 = inlined_call_operand.vmem [shape: f32[8,1], index: 0, kind: input, shape index: {}]   ;;  %s118_s1 = inlined_call_operand.vmem [shape: f32[8,1], index: 1, kind: input, shape index: {}]   ;;  %s119_s2 = inlined_call_operand.vmem [shape: f32[8,256], index: 2, kind: input, shape index: {}]   ;;  %s120_s3 = inlined_call_operand.hbm [shape: f32[8,256], index: 3, kind: output, shape index: {}]  }
   0x1   :  { %v17_v0 = vld [vmem:[%s117_s0] sm:$0xff] }
   0x2   :  { %8 = vsyncpa [#allocation3], 0  ;;  %v80_v1 = vmov 0   ;;  %v25_v2 = vld [vmem:[%s118_s1] sm:$0xff]  ;;  %v16_v5 = vld [vmem:[%s119_s2 + $0x8] sm:$0xff]  ;;  %s81_s0 = smov [#allocation2]  }
   0x3   :  { %53 = vset.pattern.permute.xlu0 %v80_v1  ;;  %v15_v4 = vld [vmem:[%s119_s2] sm:$0xff]  ;;  %s40_s20 = sshll.u32 %s81_s0, 4  ;;  %s42_s23 = sshll.u32 %s120_s3, 4  ;;  %s41_s20 = int_to_ptr.vmem [resolvable:$true] %s40_s20  ;;  %s43_s23 = int_to_ptr.hbm [resolvable:$true] %s42_s23 }
   0x4   :  { %20 = vperm.xlu0 %53, %v17_v0  }
   0xc   :  { %28 = vperm.xlu0 %53, %v25_v2  }
  0x76   :  { %v21_v3 = vpop.permute.xlu0 %20 }
  0x77   :  { %v23_v6 = vmul.f32 %v21_v3, %v15_v4  ;;  %v24_v7 = vmul.f32 %v21_v3, %v16_v5 }
  0x7e   :  { %v29_v8 = vpop.permute.xlu0 %28 }
  0x7f   :  { %v31_v9 = vadd.f32 %v29_v8, %v23_v6  ;;  %v32_v10 = vadd.f32 %v29_v8, %v24_v7 }
  0x81   :  { %33 = vst [vmem:[#allocation2] sm:$0xff] %v31_v9 }
  0x82   :  { %34 = vst [vmem:[#allocation2 + $0x8] sm:$0xff] %v32_v10 }
  0x83   :  { %45 = dma.vmem_to_hbm [thread:$0]  %s41_s20, 256, %s43_s23, [#allocation3]  }
  0x84   :  { %78 = dma.done.wait [#allocation3], 256  }
  0x85   :  { %79 = vsyncadd [#allocation3], 4294967040 }
  0x86   :  { %50 = vsyncpa [#allocation3], 1 }

</bundles_post_ra>
